<compile_context>
chip_gen: v5e
topology: v5e:2x2
jax: 0.10.0
libtpu: 0.0.40
codegen_flags: <defaults>
</compile_context>

<pallas_src>
import functools

import jax
import jax.numpy as jnp
import numpy as np
from jax import lax
from jax.experimental import pallas as pl
from jax.experimental.pallas import tpu as pltpu


def _pair(v):
    return (v, v) if isinstance(v, int) else tuple(v)


def _ceil_div(a, b):
    return -(-a // b)


def _pad_or_crop_2d(x, pad_h, pad_w):
    """F.pad semantics on the last two dims of NCHW; negative pad == crop."""
    (ht, hb), (wl, wr) = pad_h, pad_w
    x = jnp.pad(x, ((0, 0), (0, 0),
                    (max(ht, 0), max(hb, 0)),
                    (max(wl, 0), max(wr, 0))))
    H, W = x.shape[2], x.shape[3]
    return x[:, :, max(-ht, 0): H - max(-hb, 0), max(-wl, 0): W - max(-wr, 0)]


def _phase_window(k, s):
    """Uniform tap-window size covering all s output phases."""
    u = 0
    for p in range(s):
        r = (-p) % s                      # first (flipped-)kernel tap hitting phase p
        e = 0 if p == 0 else 1            # input-row offset of that phase
        t = len(range(r, k, s))           # number of taps for that phase
        u = max(u, e + t)
    return u


def _pack_phase_weights(weight, bias, kh, kw, sh, sw):
    """ConvTranspose2d weight (Cin,Cout,kh,kw) + bias (Cout,)
       -> phase-stacked (P*Cout, U*V*Cin + 1) matrix (bias = last column)."""
    cin, cout = weight.shape[0], weight.shape[1]
    # Flip spatially, channels last: Wf[ki,kj,ci,co] = W[ci,co,kh-1-ki,kw-1-kj]
    wf = jnp.transpose(weight[:, :, ::-1, ::-1], (2, 3, 0, 1))
    U, V = _phase_window(kh, sh), _phase_window(kw, sw)
    P = sh * sw
    w_ph = jnp.zeros((P, U, V, cin, cout), weight.dtype)
    for py in range(sh):
        ry = (-py) % sh
        ey = 0 if py == 0 else 1
        th = len(range(ry, kh, sh))
        for px in range(sw):
            rx = (-px) % sw
            ex = 0 if px == 0 else 1
            tw = len(range(rx, kw, sw))
            if th and tw:
                sub = wf[ry::sh, rx::sw]                    # (th, tw, cin, cout)
                w_ph = w_ph.at[py * sw + px, ey:ey + th, ex:ex + tw].set(sub)
    # Contraction-column ordering = (u, v, ci), matching the kernel's patch rows.
    w_mat = jnp.transpose(w_ph.reshape(P, U * V * cin, cout), (0, 2, 1))
    w_mat = w_mat.reshape(P * cout, U * V * cin)            # rows ordered (p, cout)
    bias_col = jnp.tile(bias[None, :], (P, 1)).reshape(P * cout, 1)
    w_full = jnp.concatenate([w_mat, bias_col.astype(w_mat.dtype)], axis=1)
    return w_full, U, V


def _convt_kernel(x_ref, w_ref, o_ref, patch_ref, *, U, V, cin, w_row, m):
    """One batch per grid step.

    x_ref:     (1, Cin, L)      flattened padded input (row stride w_row)
    w_ref:     (P*Cout, K+1)    phase-stacked packed weights, bias in column K
    o_ref:     (1, P*Cout, m)   lane-dense phase-major output
    patch_ref: (K+1, m)         VMEM im2col scratch (last row = ones for bias)
    """
    # Build the im2col patch once per batch (all offsets are static Python ints).
    for u in range(U):
        for v in range(V):
            off = u * w_row + v
            row0 = (u * V + v) * cin
            patch_ref[row0:row0 + cin, :] = x_ref[0, :, off:off + m]
    k_taps = U * V * cin
    patch_ref[k_taps:k_taps + 1, :] = jnp.ones((1, m), patch_ref.dtype)

    # Single fat MXU dot covering every phase + bias, accumulated in f32.
    acc = jnp.dot(w_ref[...], patch_ref[...],
                  preferred_element_type=jnp.float32)        # (P*Cout, m)
    o_ref[0] = acc.astype(o_ref.dtype)


class SamePadConvTranspose2dPallas:
    """JAX/Pallas re-implementation of SamePadConvTranspose2d (forward only)."""

    def __init__(self, in_channels, out_channels, kernel_size, stride=1,
                 bias=True, *, key, dtype=jnp.float32, compute_dtype=None):
        self.kh, self.kw = _pair(kernel_size)
        self.sh, self.sw = _pair(stride)
        self.cin, self.cout = in_channels, out_channels
        self.compute_dtype = compute_dtype   # e.g. jnp.bfloat16 for native MXU

        # Same padding arithmetic as the PyTorch module (F.pad order: W then H).
        ph, pw = self.kh - self.sh, self.kw - self.sw
        self.pad_h = (ph // 2 + ph % 2, ph // 2)
        self.pad_w = (pw // 2 + pw % 2, pw // 2)

        # Deterministic synthetic parameters (ConvTranspose2d layout (Cin,Cout,kh,kw)).
        kw_, kb_ = jax.random.split(key)
        fan = in_channels * self.kh * self.kw
        self.weight = (jax.random.normal(
            kw_, (in_channels, out_channels, self.kh, self.kw), dtype)
            / np.sqrt(fan)).astype(dtype)
        if bias:
            self.bias = (0.01 * jax.random.normal(kb_, (out_channels,), dtype)
                         ).astype(dtype)
        else:
            self.bias = jnp.zeros((out_channels,), dtype)

        # Phase-stacked packed weights + folded bias (computed once, VMEM-resident).
        self.w_full, self.U, self.V = _pack_phase_weights(
            self.weight, self.bias, self.kh, self.kw, self.sh, self.sw)
        if compute_dtype is not None:
            self.w_full = self.w_full.astype(compute_dtype)

    def __call__(self, x):
        kh, kw, sh, sw = self.kh, self.kw, self.sh, self.sw
        cin, cout, U, V = self.cin, self.cout, self.U, self.V
        P = sh * sw
        out_dtype = x.dtype
        N, _, H, W = x.shape

        # ---- geometry (pure arithmetic, no passes over x yet) ----
        (ht, hb), (wl, wr) = self.pad_h, self.pad_w
        Hp, Wp = H + ht + hb, W + wl + wr          # "same"-padded input size
        Hout = (Hp - 1) * sh + 2 - kh              # transposed-conv output size
        Wout = (Wp - 1) * sw + 2 - kw
        Hq, Wq = _ceil_div(Hout, sh), _ceil_div(Wout, sw)
        # Extend so every uniform (U, V) window read of the flattened input is
        # in-bounds; extension rows/cols must be ZERO (they are conv zero-pad).
        Wp_ext = max(Wp, Wq + V - 1)
        Hp_ext = max(Hp, Hq + U - 1) + (1 if V > 1 else 0)
        ext_h, ext_w = Hp_ext - Hp, Wp_ext - Wp
        L = Hp_ext * Wp_ext
        m = Hq * Wp_ext                 # per-phase output columns (wrap cols cropped)
        Kp = U * V * cin + 1            # contraction depth (+1 bias ones-row)
        PC = P * cout

        # Static OOB guard: max flattened read index must stay inside L
        # (VMEM OOB is unchecked on TPU).
        assert (U - 1) * Wp_ext + (V - 1) + m <= L, "flattened window read OOB"

        # ---- single fused pad pass over the input ----
        if min(ht, hb, wl, wr) >= 0:
            x = jnp.pad(x, ((0, 0), (0, 0),
                            (ht, hb + ext_h), (wl, wr + ext_w)))
        else:
            # stride > kernel: F.pad crop first, then zero-extend.
            x = _pad_or_crop_2d(x, self.pad_h, self.pad_w)
            x = jnp.pad(x, ((0, 0), (0, 0), (0, ext_h), (0, ext_w)))

        if self.compute_dtype is not None:
            x = x.astype(self.compute_dtype)
        x_flat = x.reshape(N, cin, L)
        w_full = self.w_full

        # ---- VMEM budget from the actual buffers (double-buffered blocks) ----
        itemsize = x_flat.dtype.itemsize
        vmem_need = (2 * cin * L            # input block (double-buffered)
                     + 2 * PC * Kp          # weight block (double-buffered)
                     + 2 * PC * m           # output block (double-buffered)
                     + Kp * m) * itemsize   # im2col scratch
        vmem_need += PC * m * 4             # f32 accumulator headroom
        vmem_limit = int(min(max(int(vmem_need * 1.5) + (2 << 20), 16 << 20),
                             64 << 20))

        kernel = functools.partial(_convt_kernel, U=U, V=V, cin=cin,
                                   w_row=Wp_ext, m=m)

        out_ph = pl.pallas_call(
            kernel,
            out_shape=jax.ShapeDtypeStruct((N, PC, m), out_dtype),
            grid=(N,),
            in_specs=[
                pl.BlockSpec((1, cin, L), lambda b: (b, 0, 0)),
                pl.BlockSpec((PC, Kp), lambda b: (0, 0)),      # constant: weights
            ],
            out_specs=pl.BlockSpec((1, PC, m), lambda b: (b, 0, 0)),
            scratch_shapes=[pltpu.VMEM((Kp, m), x_flat.dtype)],
            compiler_params=pltpu.CompilerParams(
                dimension_semantics=("parallel",),
                vmem_limit_bytes=vmem_limit),
        )(x_flat, w_full)

        # ---- epilogue: drop wrap columns, interleave phases, crop to NCHW ----
        out = out_ph.reshape(N, sh, sw, cout, Hq, Wp_ext)[..., :Wq]
        out = jnp.transpose(out, (0, 3, 4, 1, 5, 2))    # (N, Cout, Hq, sh, Wq, sw)
        out = out.reshape(N, cout, Hq * sh, Wq * sw)
        return out[:, :, :Hout, :Wout]                  # NCHW


def _reference(x, weight, bias, kernel_size, stride, pad_h, pad_w):
    """Pure-JAX reference: F.pad + ConvTranspose2d(padding=k-1) via lax."""
    sh, sw = stride
    x_pad = _pad_or_crop_2d(x, pad_h, pad_w)
    rhs = jnp.transpose(weight[:, :, ::-1, ::-1], (1, 0, 2, 3))   # (Cout,Cin,kh,kw)
    out = lax.conv_general_dilated(
        x_pad, rhs, window_strides=(1, 1),
        padding=[(0, 0), (0, 0)],
        lhs_dilation=(sh, sw),
        dimension_numbers=("NCHW", "OIHW", "NCHW"),
        precision=lax.Precision.HIGHEST)
    return out + bias[None, :, None, None]


if __name__ == "__main__":
    key = jax.random.PRNGKey(0)

    def check(cfg_key, N, CIN, COUT, H, W, ksize, stride):
        kx, kp = jax.random.split(cfg_key)
        x = jax.random.normal(kx, (N, CIN, H, W), jnp.float32)
        mod = SamePadConvTranspose2dPallas(CIN, COUT, ksize, stride=stride,
                                           bias=True, key=kp)
        out = jax.block_until_ready(mod(x))
        ref = jax.block_until_ready(
            _reference(x, mod.weight, mod.bias, _pair(ksize), _pair(stride),
                       mod.pad_h, mod.pad_w))
        assert out.shape == ref.shape, (out.shape, ref.shape)
        np.testing.assert_allclose(np.asarray(out), np.asarray(ref),
                                   rtol=1e-2, atol=1e-2)
        return out

    k0, k1, k2 = jax.random.split(key, 3)

    # Main config (typical usage of the module: k=4, s=2 upsample).
    out = check(k0, N=2, CIN=4, COUT=8, H=16, W=16, ksize=4, stride=2)
    assert out.shape == (2, 8, 32, 32), out.shape

    # Asymmetric stride with an odd kernel (sh != sw, different U/V windows).
    check(k1, N=1, CIN=4, COUT=8, H=8, W=8, ksize=3, stride=(2, 1))

    # stride > kernel: negative "same" pad (F.pad crop) path + zero-tap phases.
    check(k2, N=1, CIN=4, COUT=8, H=6, W=6, ksize=2, stride=3)

    print("KERNEL_OK")
</pallas_src>

<mosaic_0001>
module attributes {stable_mosaic.version = 11 : i64} {
  func.func @_convt_kernel(%arg0: i32, %arg1: memref<1x4x342xf32, #tpu.memory_space<vmem>>, %arg2: memref<32x37xf32, #tpu.memory_space<vmem>>, %arg3: memref<1x32x288xf32, #tpu.memory_space<vmem>>, %arg4: memref<37x288xf32, #tpu.memory_space<vmem>>) attributes {dimension_semantics = [#tpu.dimension_semantics<parallel>], iteration_bounds = array<i64: 2>, scalar_prefetch = 0 : i64, scratch_operands = 1 : i64, tpu.core_type = #tpu.core_type<tc>, window_params = [{transform_indices = @transform_0, window_bounds = array<i64: 1, 4, 342>}, {pipeline_mode = #tpu.pipeline_mode<synchronous>, transform_indices = @transform_1, window_bounds = array<i64: 32, 37>}, {transform_indices = @transform_2, window_bounds = array<i64: 1, 32, 288>}]} {
    %c0 = arith.constant 0 : index
    %c0_0 = arith.constant 0 : index
    %c0_1 = arith.constant 0 : index
    %0 = vector.load %arg1[%c0, %c0_0, %c0_1] : memref<1x4x342xf32, #tpu.memory_space<vmem>>, vector<1x4x288xf32>
    %1 = vector.shape_cast %0 : vector<1x4x288xf32> to vector<4x288xf32>
    %c0_2 = arith.constant 0 : index
    %c0_3 = arith.constant 0 : index
    %2 = vector.load %arg4[%c0_2, %c0_3] : memref<37x288xf32, #tpu.memory_space<vmem>>, vector<4x288xf32>
    tpu.vector_store %arg4[%c0_2, %c0_3], %1 {strides = array<i32>} : memref<37x288xf32, #tpu.memory_space<vmem>>, vector<4x288xf32>,
    %c0_4 = arith.constant 0 : index
    %c0_5 = arith.constant 0 : index
    %c1 = arith.constant 1 : index
    %3 = vector.load %arg1[%c0_4, %c0_5, %c1] : memref<1x4x342xf32, #tpu.memory_space<vmem>>, vector<1x4x288xf32>
    %4 = vector.shape_cast %3 : vector<1x4x288xf32> to vector<4x288xf32>
    %c4 = arith.constant 4 : index
    %c0_6 = arith.constant 0 : index
    %5 = vector.load %arg4[%c4, %c0_6] : memref<37x288xf32, #tpu.memory_space<vmem>>, vector<4x288xf32>
    tpu.vector_store %arg4[%c4, %c0_6], %4 {strides = array<i32>} : memref<37x288xf32, #tpu.memory_space<vmem>>, vector<4x288xf32>,
    %c0_7 = arith.constant 0 : index
    %c0_8 = arith.constant 0 : index
    %c2 = arith.constant 2 : index
    %6 = vector.load %arg1[%c0_7, %c0_8, %c2] : memref<1x4x342xf32, #tpu.memory_space<vmem>>, vector<1x4x288xf32>
    %7 = vector.shape_cast %6 : vector<1x4x288xf32> to vector<4x288xf32>
    %c8 = arith.constant 8 : index
    %c0_9 = arith.constant 0 : index
    %8 = vector.load %arg4[%c8, %c0_9] : memref<37x288xf32, #tpu.memory_space<vmem>>, vector<4x288xf32>
    tpu.vector_store %arg4[%c8, %c0_9], %7 {strides = array<i32>} : memref<37x288xf32, #tpu.memory_space<vmem>>, vector<4x288xf32>,
    %c0_10 = arith.constant 0 : index
    %c0_11 = arith.constant 0 : index
    %c18 = arith.constant 18 : index
    %9 = vector.load %arg1[%c0_10, %c0_11, %c18] : memref<1x4x342xf32, #tpu.memory_space<vmem>>, vector<1x4x288xf32>
    %10 = vector.shape_cast %9 : vector<1x4x288xf32> to vector<4x288xf32>
    %c12 = arith.constant 12 : index
    %c0_12 = arith.constant 0 : index
    %11 = vector.load %arg4[%c12, %c0_12] : memref<37x288xf32, #tpu.memory_space<vmem>>, vector<4x288xf32>
    tpu.vector_store %arg4[%c12, %c0_12], %10 {strides = array<i32>} : memref<37x288xf32, #tpu.memory_space<vmem>>, vector<4x288xf32>,
    %c0_13 = arith.constant 0 : index
    %c0_14 = arith.constant 0 : index
    %c19 = arith.constant 19 : index
    %12 = vector.load %arg1[%c0_13, %c0_14, %c19] : memref<1x4x342xf32, #tpu.memory_space<vmem>>, vector<1x4x288xf32>
    %13 = vector.shape_cast %12 : vector<1x4x288xf32> to vector<4x288xf32>
    %c16 = arith.constant 16 : index
    %c0_15 = arith.constant 0 : index
    %14 = vector.load %arg4[%c16, %c0_15] : memref<37x288xf32, #tpu.memory_space<vmem>>, vector<4x288xf32>
    tpu.vector_store %arg4[%c16, %c0_15], %13 {strides = array<i32>} : memref<37x288xf32, #tpu.memory_space<vmem>>, vector<4x288xf32>,
    %c0_16 = arith.constant 0 : index
    %c0_17 = arith.constant 0 : index
    %c20 = arith.constant 20 : index
    %15 = vector.load %arg1[%c0_16, %c0_17, %c20] : memref<1x4x342xf32, #tpu.memory_space<vmem>>, vector<1x4x288xf32>
    %16 = vector.shape_cast %15 : vector<1x4x288xf32> to vector<4x288xf32>
    %c20_18 = arith.constant 20 : index
    %c0_19 = arith.constant 0 : index
    %17 = vector.load %arg4[%c20_18, %c0_19] : memref<37x288xf32, #tpu.memory_space<vmem>>, vector<4x288xf32>
    tpu.vector_store %arg4[%c20_18, %c0_19], %16 {strides = array<i32>} : memref<37x288xf32, #tpu.memory_space<vmem>>, vector<4x288xf32>,
    %c0_20 = arith.constant 0 : index
    %c0_21 = arith.constant 0 : index
    %c36 = arith.constant 36 : index
    %18 = vector.load %arg1[%c0_20, %c0_21, %c36] : memref<1x4x342xf32, #tpu.memory_space<vmem>>, vector<1x4x288xf32>
    %19 = vector.shape_cast %18 : vector<1x4x288xf32> to vector<4x288xf32>
    %c24 = arith.constant 24 : index
    %c0_22 = arith.constant 0 : index
    %20 = vector.load %arg4[%c24, %c0_22] : memref<37x288xf32, #tpu.memory_space<vmem>>, vector<4x288xf32>
    tpu.vector_store %arg4[%c24, %c0_22], %19 {strides = array<i32>} : memref<37x288xf32, #tpu.memory_space<vmem>>, vector<4x288xf32>,
    %c0_23 = arith.constant 0 : index
    %c0_24 = arith.constant 0 : index
    %c37 = arith.constant 37 : index
    %21 = vector.load %arg1[%c0_23, %c0_24, %c37] : memref<1x4x342xf32, #tpu.memory_space<vmem>>, vector<1x4x288xf32>
    %22 = vector.shape_cast %21 : vector<1x4x288xf32> to vector<4x288xf32>
    %c28 = arith.constant 28 : index
    %c0_25 = arith.constant 0 : index
    %23 = vector.load %arg4[%c28, %c0_25] : memref<37x288xf32, #tpu.memory_space<vmem>>, vector<4x288xf32>
    tpu.vector_store %arg4[%c28, %c0_25], %22 {strides = array<i32>} : memref<37x288xf32, #tpu.memory_space<vmem>>, vector<4x288xf32>,
    %c0_26 = arith.constant 0 : index
    %c0_27 = arith.constant 0 : index
    %c38 = arith.constant 38 : index
    %24 = vector.load %arg1[%c0_26, %c0_27, %c38] : memref<1x4x342xf32, #tpu.memory_space<vmem>>, vector<1x4x288xf32>
    %25 = vector.shape_cast %24 : vector<1x4x288xf32> to vector<4x288xf32>
    %c32 = arith.constant 32 : index
    %c0_28 = arith.constant 0 : index
    %26 = vector.load %arg4[%c32, %c0_28] : memref<37x288xf32, #tpu.memory_space<vmem>>, vector<4x288xf32>
    tpu.vector_store %arg4[%c32, %c0_28], %25 {strides = array<i32>} : memref<37x288xf32, #tpu.memory_space<vmem>>, vector<4x288xf32>,
    %cst = arith.constant 1.000000e+00 : f32
    %27 = vector.broadcast %cst : f32 to vector<1x288xf32>
    %c36_29 = arith.constant 36 : index
    %c0_30 = arith.constant 0 : index
    %28 = vector.load %arg4[%c36_29, %c0_30] : memref<37x288xf32, #tpu.memory_space<vmem>>, vector<1x288xf32>
    tpu.vector_store %arg4[%c36_29, %c0_30], %27 {strides = array<i32>} : memref<37x288xf32, #tpu.memory_space<vmem>>, vector<1x288xf32>,
    %c0_31 = arith.constant 0 : index
    %c0_32 = arith.constant 0 : index
    %29 = vector.load %arg2[%c0_31, %c0_32] : memref<32x37xf32, #tpu.memory_space<vmem>>, vector<32x37xf32>
    %c0_33 = arith.constant 0 : index
    %c0_34 = arith.constant 0 : index
    %30 = vector.load %arg4[%c0_33, %c0_34] : memref<37x288xf32, #tpu.memory_space<vmem>>, vector<37x288xf32>
    %cst_35 = arith.constant dense<0.000000e+00> : vector<32x288xf32>
    %31 = tpu.matmul %29, %30, %cst_35 {dimension_numbers = #tpu.dot_dimension_numbers<[1], [0], [0], [1], [0, 0, 1, 1], [], []>} : vector<32x37xf32>, vector<37x288xf32>, vector<32x288xf32> -> vector<32x288xf32>
    %c0_36 = arith.constant 0 : index
    %c0_37 = arith.constant 0 : index
    %c0_38 = arith.constant 0 : index
    %32 = vector.load %arg3[%c0_36, %c0_37, %c0_38] : memref<1x32x288xf32, #tpu.memory_space<vmem>>, vector<1x32x288xf32>
    %33 = vector.shape_cast %32 : vector<1x32x288xf32> to vector<32x288xf32>
    %34 = vector.shape_cast %31 : vector<32x288xf32> to vector<1x32x288xf32>
    tpu.vector_store %arg3[%c0_36, %c0_37, %c0_38], %34 {strides = array<i32>} : memref<1x32x288xf32, #tpu.memory_space<vmem>>, vector<1x32x288xf32>,
    return
  }
  func.func @transform_0(%arg0: i32) -> (i32, i32, i32) {
    %c0_i32 = arith.constant 0 : i32
    %c0_i32_0 = arith.constant 0 : i32
    %c0_i32_1 = arith.constant 0 : i32
    return %arg0, %c0_i32, %c0_i32_0 : i32, i32, i32
  }
  func.func @transform_1(%arg0: i32) -> (i32, i32) {
    %c0_i32 = arith.constant 0 : i32
    %c0_i32_0 = arith.constant 0 : i32
    %c0_i32_1 = arith.constant 0 : i32
    return %c0_i32, %c0_i32_0 : i32, i32
  }
  func.func @transform_2(%arg0: i32) -> (i32, i32, i32) {
    %c0_i32 = arith.constant 0 : i32
    %c0_i32_0 = arith.constant 0 : i32
    %c0_i32_1 = arith.constant 0 : i32
    return %arg0, %c0_i32, %c0_i32_0 : i32, i32, i32
  }
}

</mosaic_0001>

<bundles_post_ra>
// kernel: tpu_custom_call.1
= control target key start
LH: loop header
LB: loop body
LE: loop exit
PB: predicated region body
PF: predicated region fallthrough
CT: control target
= control target key end

     0   :  { %7 = vsyncpa [#allocation4], 0  ;;  %s1138_s0 = inlined_call_operand.hbm [shape: f32[2,4,342], index: 0, kind: input, shape index: {}]   ;;  %s1139_s1 = inlined_call_operand.hbm [shape: f32[32,37], index: 1, kind: input, shape index: {}]   ;;  %s1140_s2 = inlined_call_operand.hbm [shape: f32[2,32,288], index: 2, kind: output, shape index: {}]  }
   0x1   :  { %9 = vsyncpa [#allocation4 + $0x1], 0 }
   0x2   :  { %10 = vsyncpa [#allocation7], 0 }
   0x3   :  { %11 = vsyncpa [#allocation5], 0 }
   0x4   :  { %13 = vsyncpa [#allocation5 + $0x1], 0  ;;  %s920_s9 = smov 0   ;;  %s922_s10 = smov 0  }
   0x5   :  { %s924_s11 = smov 0   ;;  %s926_s12 = smov 0  }
   0x6 LB: > { %s108_s15 = sshll.u32 %s1139_s1, 4  ;;  %s944_s16 = sadd.s32 4294967295, %s889_s12   ;;  %s889_s12 = sphi %s926_s12, %s1150_s12   ;;  %s885_s11 = sphi %s924_s11, %s1149_s11   ;;  %s881_s10 = sphi %s922_s10, %s1148_s10   ;;  %s877_s9 = sphi %s920_s9, %s1147_s9   ;;  %s109_s15 = int_to_ptr.hbm [resolvable:$true] %s108_s15 }
   0x7   : > { %p650_p0 = scmp.ge.s32.totalorder %s889_s12, 1  ;;  %p40_p1 = scmp.eq.s32.totalorder %s944_s16, 0 }
   0x8   : > { %p97_p2 = scmp.lt.s32.totalorder %s889_s12, 3  ;;  %s891_s18 = smov [#allocation6]  }
   0x9   : > { %s110_s19 = sshll.u32 %s891_s18, 4  ;;  %s892_s20 = smov 128   ;;  %s111_s19 = int_to_ptr.vmem [resolvable:$true] %s110_s19 }
   0xa   : > { %p949_p3 = pnand %p650_p0, %p97_p2  ;;  %s893_s21 = smov 8  }
   0xb   : > { %s649_s22 = sadd.s32 4294967294, %s889_s12   ;;  %s960_s23 = sadd.s32 1, %s889_s12  }
   0xc   : > { %p697_p4 = pneg %p949_p3  ;;  %s26_s24 = sadd.s32 1, %s885_s11 }
   0xd   : > { %s23_s25 = ssub.s32 %s889_s12, %s960_s23  ;;  %p33_p7 = scmp.ne.s32.totalorder %s885_s11, %s881_s10 }
   0xe   : > { %p698_p6 = pnand %p697_p4, %p40_p1  ;;  %p24_p8 = scmp.eq.s32.totalorder %s23_s25, 0 }
   0xf   : > { %p34_p9 = scmp.eq.s32.totalorder %s889_s12, 0  ;;  %p39_p10 = scmp.ne.s32.totalorder %s881_s10, %s877_s9 }
  0x10   : > { %700 = dma.hbm_to_vmem [thread:$0]  (!%p698_p6), %s109_s15, 512, %s111_s19, [#allocation7], %s892_s20, %s892_s20, %s893_s21  }
  0x11   : > { %p84_p11 = scmp.eq.s32.totalorder %s944_s16, 1  ;;  %p35_p12 = por %p34_p9, %p33_p7 }
  0x12   : > { %s972_s26 = scalar_select %p24_p8, %s885_s11, %s26_s24  }
  0x13   : > { %p976_p13 = por %p40_p1, %p39_p10  ;;  %p980_p0 = por %p84_p11, %p33_p7 }
  0x14   : > { %p90_p2 = scmp.eq.s32.totalorder %s649_s22, 1  ;;  %p710_p4 = scmp.lt.s32.totalorder %s889_s12, 2 }
  0x15   : > { %s124_s29 = sand.u32 1, %s885_s11   ;;  %s685_s5 = smul.u32 12, %s889_s12 }
  0x16   : > { %p986_p6 = por %p90_p2, %p39_p10  ;;  %s684_s3 = smul.u32 12, %s124_s29 }
  0x17   : > { %p990_p8 = pnand %p710_p4, %p35_p12  ;;  %s133_s8 = scalar_lea.hbm %s1138_s0, %s685_s5 }
  0x18   : > { %s128_s13 = scalar_lea.vmem [#allocation3], %s684_s3  ;;  %s135_s15 = sshll.u32 %s133_s8, 4  ;;  %s136_s15 = int_to_ptr.hbm [resolvable:$true] %s135_s15 }
  0x19   : > { %s137_s14 = sshll.u32 %s128_s13, 4  ;;  %s125_s18 = scalar_lea.sflag [#allocation4], %s124_s29  ;;  %s138_s14 = int_to_ptr.vmem [resolvable:$true] %s137_s14 }
  0x1a   : > { %s789_s19 = sshra.s32 %s136_s15, 4  ;;  %p793_p9 = pneg %p990_p8  ;;  %s790_s19 = int_to_ptr.hbm [resolvable:$true] %s789_s19 }
  0x1b   : > { %s791_s20 = scalar_lea.hbm %s790_s19, 12  ;;  %s796_s24 = scalar_lea.hbm %s1138_s0, 24 }
  0x1c   : > { %p792_p7 = scmp.ne.s32.totalorder %s790_s19, %s791_s20  ;;  %p797_p12 = scmp.lt.s32.totalorder %s790_s19, %s1138_s0 }
  0x1d   : > { %p798_p2 = scmp.lt.s32.totalorder %s796_s24, %s791_s20 }
  0x1e   : > { %p794_p10 = pnand %p793_p9, %p792_p7 }
  0x1f   : > { %p799_p4 = por %p798_p2, %p797_p12 }
  0x20   : > { %p795_p11 = pneg %p794_p10 }
  0x22   : > { %p800_p5 = pnand %p799_p4, %p795_p11 }
  0x24   : > { %803 = shalt.err (!%p800_p5)
}
  0x25   : > { %704 = dma.hbm_to_vmem [thread:$0]  (!%p990_p8), %s136_s15, 192, %s138_s14, %s125_s18  }
  0x26   : > { %146 = sbr.rel (%p949_p3) target bundleno = 423 (0x1a7), region = 28  ;;  %s1011_s29 = sand.u32 (!%p949_p3), 1, %s881_s10  }
  0x27   : > { %s686_s3 = smul.u32 (!%p949_p3), 12, %s1011_s29  ;;  %s149_s6 = scalar_lea.sflag (!%p949_p3), [#allocation4], %s1011_s29 }
  0x29   : > { %s1015_s7 = scalar_lea.vmem (!%p949_p3), [#allocation3], %s686_s3 }
  0x2b   : > { %864 = dma.done.wait (%p976_p13), %s149_s6, 192  }
  0x2c   : > { %866 = vsyncadd (%p976_p13), %s149_s6, 4294967104 }
  0x2d   : > { %868 = dma.done.wait (%p40_p1), [#allocation7], 512  }
  0x2e   : > { %870 = vsyncadd (%p40_p1), [#allocation7], 4294966784  ;;  %v180_v0 = vld [vmem:[%s1015_s7 + $0x8] sm:$0xf]  ;;  %v1027_v1 = vld [vmem:[%s1015_s7] sm:$0xff]  ;;  %s894_s17 = smov 127   ;;  %v401_v49 = vlaneseq }
  0x2f   : > { %185 = vst [vmem:[#allocation1 + $0x10] ss:$2 sm:$0xff] %v180_v0  ;;  %v197_v2 = vld [vmem:[%s1015_s7 + $0x8] sm:$0xf]  ;;  %s895_s27 = smov 126   ;;  %s896_s4 = smov 110  }
  0x30   : > { %183 = vst [vmem:[#allocation1] ss:$2 sm:$0xff] %v1027_v1  ;;  %v224_v6 = vld [vmem:[%s1015_s7 + $0x8] sm:$0xf]  ;;  %s897_s8 = smov 109   ;;  %s898_s13 = smov 108  }
  0x31   : > { %v249_v10 = vld [vmem:[%s1015_s7 + $0x8] sm:$0xf]  ;;  %s899_s14 = smov 92   ;;  %s900_s15 = smov 91   ;;  %vm194_vm0 = vcmask 257024   ;;  %vm221_vm1 = vcmask 261124  }
  0x32   : > { %v275_v14 = vld [vmem:[%s1015_s7 + $0x8] sm:$0xf]  ;;  %s901_s18 = smov 90   ;;  %vm316_vm2 = vcmask 883712   ;;  %vm290_vm3 = vcmask 891904   ;;  %vm403_vm4 = vcmp.lt.s32.totalorder %v401_v49, 288 }
  0x33   : > { %v300_v18 = vld [vmem:[%s1015_s7 + $0x8] sm:$0xf]  ;;  %v902_v50 = vmov 1.0   ;;  %vm341_vm5 = vcmask 752640   ;;  %vm213_vm6 = vcmask 1039360   ;;  %vm367_vm7 = vcmask 744448  }
  0x34   : > { %v326_v22 = vld [vmem:[%s1015_s7 + $0x8] sm:$0xf]  ;;  %406 = vst.msk [vmem:[#allocation2 + $0x64] ss:$8 sm:$0x7] %vm403_vm4, %v902_v50  ;;  %vm392_vm8 = vcmask 736256  }
  0x35   : > { %v351_v26 = vld [vmem:[%s1015_s7 + $0x8] sm:$0xf]  ;;  %vm239_vm9 = vcmask 1031168   ;;  %vm440_vm10 = vcmask 1044480   ;;  %vm265_vm11 = vcmask 900096   ;;  %vm427_vm12 = vcmask 302080  }
  0x36   : > { %v1031_v3 = vld.sshfl [vmem:[#allocation1 + $0x10] sm:$0xff pattern:$0x75316420]  ;;  %s687_s19 = smul.u32 96, %s1011_s29  ;;  %vm539_vm13 = vcmask 261120   ;;  %s551_s6 = scalar_lea.sflag [#allocation5], %s1011_s29 }
  0x37   : > { %203 = vst [vmem:[#allocation1 + $0x11] ss:$2 sm:$0xff] %v197_v2  ;;  %v186_v4 = vld.sshfl [vmem:[#allocation1] sm:$0xff pattern:$0x75316420]  ;;  %s688_s21 = smul.u32 96, %s944_s16 }
  0x38   : > { %v187_v5 = vld.sshfl [vmem:[#allocation1 + $0x8] sm:$0xff pattern:$0x75316420]  ;;  %192 = vst [vmem:[#allocation2] sm:$0xf] %v186_v4  ;;  %s178_s20 = scalar_lea.vmem [#allocation8], %s687_s19 }
  0x39   : > { %201 = vst [vmem:[#allocation1 + $0x1] ss:$2 sm:$0xff] %v1027_v1  ;;  %v377_v30 = vld [vmem:[%s1015_s7 + $0x8] sm:$0xf]  ;;  %s562_s25 = scalar_lea.hbm %s1140_s2, %s688_s21  ;;  %s563_s5 = sshll.u32 %s178_s20, 4  ;;  %s564_s5 = int_to_ptr.vmem [resolvable:$true] %s563_s5 }
  0x3a   : > { %193 = vst [vmem:[#allocation2 + $0x8] sm:$0xf] %v187_v5  ;;  %s565_s3 = sshll.u32 %s562_s25, 4  ;;  %s566_s3 = int_to_ptr.hbm [resolvable:$true] %s565_s3 }
  0x3b   : > { %195 = vst.msk [vmem:[#allocation2 + $0x10] sm:$0xf] %vm194_vm0, %v1031_v3  ;;  %s833_s16 = sshra.s32 %s566_s3, 4  ;;  %s834_s16 = int_to_ptr.hbm [resolvable:$true] %s833_s16 }
  0x3c   : > { %s835_s7 = scalar_lea.hbm %s834_s16, 96  ;;  %p840_p13 = scmp.lt.s32.totalorder %s834_s16, %s1140_s2 }
  0x3d   : > { %p836_p1 = scmp.ne.s32.totalorder %s834_s16, %s835_s7 }
  0x3e   : > { %v206_v7 = vld.sshfl [vmem:[#allocation1 + $0x10] sm:$0xff pattern:$0x75316420] }
  0x3f   : > { %211 = vrot.lane.b32.xlu0 %v206_v7, %s894_s17  ;;  %229 = vst [vmem:[#allocation1 + $0x10] ss:$2 sm:$0xff] %v224_v6  ;;  %p837_p3 = pnand %p836_p1, %p980_p0 }
  0x40   : > { %v1036_v8 = vld.sshfl [vmem:[#allocation1] sm:$0xff pattern:$0x75316420]  ;;  %v1038_v9 = vld.sshfl [vmem:[#allocation1 + $0x8] sm:$0xff pattern:$0x75316420] }
  0x41   : > { %227 = vst [vmem:[#allocation1] ss:$2 sm:$0xff] %v1027_v1  ;;  %p838_p5 = pneg %p837_p3 }
  0x46   : > { %v232_v11 = vld.sshfl [vmem:[#allocation1 + $0x10] sm:$0xff pattern:$0x75316420] }
  0x47   : > { %237 = vrot.lane.b32.xlu2 %v232_v11, %s895_s27  ;;  %255 = vst [vmem:[#allocation1 + $0x11] ss:$2 sm:$0xff] %v249_v10 }
  0x48   : > { %v230_v12 = vld.sshfl [vmem:[#allocation1] sm:$0xff pattern:$0x75316420]  ;;  %v231_v13 = vld.sshfl [vmem:[#allocation1 + $0x8] sm:$0xff pattern:$0x75316420] }
  0x49   : > { %253 = vst [vmem:[#allocation1 + $0x1] ss:$2 sm:$0xff] %v1027_v1 }
  0x4e   : > { %v258_v15 = vld.sshfl [vmem:[#allocation1 + $0x10] sm:$0xff pattern:$0x75316420] }
  0x4f   : > { %263 = vrot.lane.b32.xlu0 %v258_v15, %s896_s4  ;;  %280 = vst [vmem:[#allocation1 + $0x10] ss:$2 sm:$0xff] %v275_v14 }
  0x50   : > { %v256_v16 = vld.sshfl [vmem:[#allocation1] sm:$0xff pattern:$0x75316420]  ;;  %v257_v17 = vld.sshfl [vmem:[#allocation1 + $0x8] sm:$0xff pattern:$0x75316420] }
  0x51   : > { %278 = vst [vmem:[#allocation1] ss:$2 sm:$0xff] %v1027_v1 }
  0x56   : > { %v283_v19 = vld.sshfl [vmem:[#allocation1 + $0x10] sm:$0xff pattern:$0x75316420] }
  0x57   : > { %288 = vrot.lane.b32.xlu1 %v283_v19, %s897_s8  ;;  %306 = vst [vmem:[#allocation1 + $0x11] ss:$2 sm:$0xff] %v300_v18 }
  0x58   : > { %v282_v20 = vld.sshfl [vmem:[#allocation1 + $0x8] sm:$0xff pattern:$0x75316420]  ;;  %v281_v21 = vld.sshfl [vmem:[#allocation1] sm:$0xff pattern:$0x75316420] }
  0x59   : > { %286 = vrot.lane.b32.xlu0 %v282_v20, %s897_s8  ;;  %284 = vrot.lane.b32.xlu2 %v281_v21, %s897_s8  ;;  %304 = vst [vmem:[#allocation1 + $0x1] ss:$2 sm:$0xff] %v1027_v1  ;;  %v408_v20 = vld [vmem:[#allocation6] sm:$0xff] }
  0x5e   : > { %v309_v23 = vld.sshfl [vmem:[#allocation1 + $0x10] sm:$0xff pattern:$0x75316420] }
  0x5f   : > { %331 = vst [vmem:[#allocation1 + $0x10] ss:$2 sm:$0xff] %v326_v22 }
  0x60   : > { %v307_v24 = vld.sshfl [vmem:[#allocation1] sm:$0xff pattern:$0x75316420]  ;;  %v308_v25 = vld.sshfl [vmem:[#allocation1 + $0x8] sm:$0xff pattern:$0x75316420] }
  0x61   : > { %314 = vrot.lane.b32.xlu2 %v309_v23, %s898_s13  ;;  %310 = vrot.lane.b32.xlu1 %v307_v24, %s898_s13  ;;  %329 = vst [vmem:[#allocation1] ss:$2 sm:$0xff] %v1027_v1 }
  0x66   : > { %v334_v27 = vld.sshfl [vmem:[#allocation1 + $0x10] sm:$0xff pattern:$0x75316420] }
  0x67   : > { %357 = vst [vmem:[#allocation1 + $0x11] ss:$2 sm:$0xff] %v351_v26  ;;  %339 = vrot.lane.b32.xlu0 %v334_v27, %s899_s14  ;;  %v409_v27 = vld [vmem:[#allocation6 + $0x8] sm:$0xff] }
  0x68   : > { %v332_v28 = vld.sshfl [vmem:[#allocation1] sm:$0xff pattern:$0x75316420]  ;;  %v333_v29 = vld.sshfl [vmem:[#allocation1 + $0x8] sm:$0xff pattern:$0x75316420] }
  0x69   : > { %312 = vrot.lane.b32.xlu2 %v308_v25, %s898_s13  ;;  %335 = vrot.lane.b32.xlu1 %v332_v28, %s899_s14  ;;  %355 = vst [vmem:[#allocation1 + $0x1] ss:$2 sm:$0xff] %v1027_v1 }
  0x6e   : > { %v360_v31 = vld.sshfl [vmem:[#allocation1 + $0x10] sm:$0xff pattern:$0x75316420] }
  0x6f   : > { %382 = vst [vmem:[#allocation1 + $0x10] ss:$2 sm:$0xff] %v377_v30 }
  0x70   : > { %v358_v32 = vld.sshfl [vmem:[#allocation1] sm:$0xff pattern:$0x75316420]  ;;  %v359_v33 = vld.sshfl [vmem:[#allocation1 + $0x8] sm:$0xff pattern:$0x75316420] }
  0x71   : > { %337 = vrot.lane.b32.xlu2 %v333_v29, %s899_s14  ;;  %365 = vrot.lane.b32.xlu1 %v360_v31, %s900_s15  ;;  %380 = vst [vmem:[#allocation1] ss:$2 sm:$0xff] %v1027_v1 }
  0x72   : > { %361 = vrot.lane.b32.xlu0 %v358_v32, %s900_s15  ;;  %v410_v32 = vld [vmem:[#allocation6 + $0x10] sm:$0xff] }
  0x76   : > { %v385_v34 = vld.sshfl [vmem:[#allocation1 + $0x10] sm:$0xff pattern:$0x75316420] }
  0x78   : > { %v384_v35 = vld.sshfl [vmem:[#allocation1 + $0x8] sm:$0xff pattern:$0x75316420]  ;;  %v383_v36 = vld.sshfl [vmem:[#allocation1] sm:$0xff pattern:$0x75316420] }
  0x79   : > { %259 = vrot.lane.b32.xlu2 %v256_v16, %s896_s4  ;;  %363 = vrot.lane.b32.xlu1 %v359_v33, %s900_s15  ;;  %v411_v33 = vld [vmem:[#allocation6 + $0x18] sm:$0xff] }
  0x7a   : > { %390 = vrot.lane.b32.xlu0 %v385_v34, %s901_s18 }
  0x81   : > { %235 = vrot.lane.b32.xlu1 %v231_v13, %s895_s27  ;;  %388 = vrot.lane.b32.xlu2 %v384_v35, %s901_s18 }
  0x82   : > { %233 = vrot.lane.b32.xlu0 %v230_v12, %s895_s27 }
  0x89   : > { %209 = vrot.lane.b32.xlu2 %v1038_v9, %s894_s17  ;;  %386 = vrot.lane.b32.xlu1 %v383_v36, %s901_s18 }
  0x8a   : > { %261 = vrot.lane.b32.xlu0 %v257_v17, %s896_s4  ;;  %s839_s4 = scalar_lea.hbm %s1140_s2, 192 }
  0x8b   : > { %p841_p8 = scmp.lt.s32.totalorder %s839_s4, %s835_s7 }
  0x8d   : > { %p842_p7 = por %p841_p8, %p840_p13 }
  0x8f   : > { %p843_p9 = pnand %p842_p7, %p838_p5 }
  0x91   : > { %207 = vrot.lane.b32.xlu1 %v1036_v8, %s894_s17 }
  0xa1   : > { %v238_v37 = vpop.permute.xlu2 %237 }
  0xa2   : > { %247 = vst.msk [vmem:[#allocation2 + $0x28] sm:$0xf] %vm194_vm0, %v238_v37 }
  0xb1   : > { %v212_v38 = vpop.permute.xlu0 %211 }
  0xb2   : > { %222 = vst.msk [vmem:[#allocation2 + $0x10] sm:$0xf0] %vm221_vm1, %v212_v38 }
  0xb3   : > { %v285_v39 = vpop.permute.xlu2 %284 }
  0xb9   : > { %v414_v21 = vld [vmem:[#allocation2 + $0x10] sm:$0xff] }
  0xbb   : > { %v315_v40 = vpop.permute.xlu2 %314 }
  0xbc   : > { %324 = vst.msk [vmem:[#allocation2 + $0x40] sm:$0xf0] %vm221_vm1, %v315_v40 }
  0xc1   : > { %v1068_v41 = vpop.permute.xlu0 %263 }
  0xc2   : > { %273 = vst.msk [vmem:[#allocation2 + $0x28] sm:$0xf0] %vm221_vm1, %v1068_v41 }
  0xc3   : > { %v313_v42 = vpop.permute.xlu2 %312 }
  0xc4   : > { %v318_v43 = vsel %vm316_vm2, %v313_v42, %v315_v40 }
  0xc5   : > { %323 = vst [vmem:[#allocation2 + $0x38] sm:$0xf0] %v318_v43 }
  0xc9   : > { %v289_v44 = vpop.permute.xlu1 %288  ;;  %v417_v17 = vld [vmem:[#allocation2 + $0x28] sm:$0xff] }
  0xca   : > { %298 = vst.msk [vmem:[#allocation2 + $0x40] sm:$0xf] %vm194_vm0, %v289_v44 }
  0xcb   : > { %v287_v45 = vpop.permute.xlu0 %286  ;;  %v338_v46 = vpop.permute.xlu2 %337 }
  0xcc   : > { %v291_v47 = vsel %vm290_vm3, %v285_v39, %v287_v45  ;;  %v292_v48 = vsel %vm290_vm3, %v287_v45, %v289_v44 }
  0xcd   : > { %296 = vst [vmem:[#allocation2 + $0x30] sm:$0xf] %v291_v47 }
  0xce   : > { %297 = vst [vmem:[#allocation2 + $0x38] sm:$0xf] %v292_v48 }
  0xd1   : > { %v420_v13 = vld [vmem:[#allocation2 + $0x40] sm:$0xff] }
  0xd3   : > { %v311_v51 = vpop.permute.xlu1 %310  ;;  %v260_v52 = vpop.permute.xlu2 %259 }
  0xd4   : > { %v317_v53 = vsel %vm316_vm2, %v311_v51, %v313_v42 }
  0xd5   : > { %322 = vst [vmem:[#allocation2 + $0x30] sm:$0xf0] %v317_v53  ;;  %v419_v12 = vld [vmem:[#allocation2 + $0x38] sm:$0xff] }
  0xd9   : > { %v340_v54 = vpop.permute.xlu0 %339 }
  0xda   : > { %v343_v55 = vsel %vm341_vm5, %v338_v46, %v340_v54  ;;  %349 = vst.msk [vmem:[#allocation2 + $0x58] sm:$0xf] %vm194_vm0, %v340_v54 }
  0xdb   : > { %348 = vst [vmem:[#allocation2 + $0x50] sm:$0xf] %v343_v55  ;;  %v336_v56 = vpop.permute.xlu1 %335  ;;  %v389_v57 = vpop.permute.xlu2 %388 }
  0xdc   : > { %v342_v58 = vsel %vm341_vm5, %v336_v56, %v338_v46  ;;  %v418_v29 = vld [vmem:[#allocation2 + $0x30] sm:$0xff] }
  0xdd   : > { %347 = vst [vmem:[#allocation2 + $0x48] sm:$0xf] %v342_v58 }
  0xe3   : > { %v366_v59 = vpop.permute.xlu1 %365  ;;  %v210_v60 = vpop.permute.xlu2 %209 }
  0xe4   : > { %375 = vst.msk [vmem:[#allocation2 + $0x58] sm:$0xf0] %vm221_vm1, %v366_v59  ;;  %v362_v61 = vpop.permute.xlu0 %361  ;;  %v215_v62 = vsel %vm213_vm6, %v210_v60, %v212_v38 }
  0xe5   : > { %220 = vst [vmem:[#allocation2 + $0x8] sm:$0xf0] %v215_v62 }
  0xeb   : > { %v364_v63 = vpop.permute.xlu1 %363  ;;  %v423_v11 = vld [vmem:[#allocation2 + $0x58] sm:$0xff] }
  0xec   : > { %v368_v0 = vsel %vm367_vm7, %v362_v61, %v364_v63  ;;  %v369_v1 = vsel %vm367_vm7, %v364_v63, %v366_v59  ;;  %v391_v2 = vpop.permute.xlu0 %390  ;;  %v413_v28 = vld [vmem:[#allocation2 + $0x8] sm:$0xff] }
  0xed   : > { %373 = vst [vmem:[#allocation2 + $0x48] sm:$0xf0] %v368_v0  ;;  %v394_v3 = vsel %vm392_vm8, %v389_v57, %v391_v2 }
  0xee   : > { %374 = vst [vmem:[#allocation2 + $0x50] sm:$0xf0] %v369_v1 }
  0xef   : > { %399 = vst [vmem:[#allocation2 + $0x68] sm:$0xf] %v394_v3 }
  0xf0   : > { %400 = vst.msk [vmem:[#allocation2 + $0x70] sm:$0xf] %vm194_vm0, %v391_v2 }
  0xf3   : > { %v236_v4 = vpop.permute.xlu1 %235 }
  0xf4   : > { %v241_v5 = vsel %vm239_vm9, %v236_v4, %v238_v37  ;;  %v234_v6 = vpop.permute.xlu0 %233  ;;  %v421_v26 = vld [vmem:[#allocation2 + $0x48] sm:$0xff] }
  0xf5   : > { %246 = vst [vmem:[#allocation2 + $0x20] sm:$0xf] %v241_v5  ;;  %v240_v7 = vsel %vm239_vm9, %v234_v6, %v236_v4  ;;  %v422_v10 = vld [vmem:[#allocation2 + $0x50] sm:$0xff] }
  0xf6   : > { %245 = vst [vmem:[#allocation2 + $0x18] sm:$0xf] %v240_v7  ;;  %v425_v8 = vld [vmem:[#allocation2 + $0x68] sm:$0x1f] }
  0xf7   : > { %v426_v9 = vld [vmem:[#allocation2 + $0x70] sm:$0x1f]  ;;  %679 = vmatpush.msk.msra.mxu1 %vm440_vm10, %v425_v8 }
  0xf8   : > { %666 = vmatpush.msk.msra.mxu2 %vm440_vm10, %v426_v9 }
  0xf9   : > { %680 = vmatpush.msra.mxu1 %v422_v10 }
  0xfa   : > { %520 = vmatpush.msra.mxu2 %v423_v11 }
  0xfb   : > { %681 = vmatpush.msra.mxu1 %v419_v12  ;;  %v387_v14 = vpop.permute.xlu1 %386 }
  0xfc   : > { %521 = vmatpush.msra.mxu2 %v420_v13  ;;  %v262_v15 = vpop.permute.xlu0 %261  ;;  %v393_v16 = vsel %vm392_vm8, %v387_v14, %v389_v57 }
  0xfd   : > { %v266_v18 = vsel %vm265_vm11, %v260_v52, %v262_v15  ;;  %v267_v19 = vsel %vm265_vm11, %v262_v15, %v1068_v41  ;;  %398 = vst [vmem:[#allocation2 + $0x60] sm:$0xf] %v393_v16 }
  0xfe   : > { %522 = vmatpush.msra.mxu2 %v417_v17  ;;  %271 = vst [vmem:[#allocation2 + $0x18] sm:$0xf0] %v266_v18 }
  0xff   : > { %272 = vst [vmem:[#allocation2 + $0x20] sm:$0xf0] %v267_v19 }
 0x100   : > { %523 = vmatpush.msra.mxu2 %v414_v21 }
 0x101   : > { %667 = vmatmul.msk.f32.vlgmr.msra.gmra.mxu2 %vm427_vm12, %v408_v20 }
 0x103   : > { %v208_v22 = vpop.permute.xlu1 %207 }
 0x104   : > { %v214_v23 = vsel %vm213_vm6, %v208_v22, %v210_v60  ;;  %v424_v24 = vld [vmem:[#allocation2 + $0x60] sm:$0x1f] }
 0x105   : > { %219 = vst [vmem:[#allocation2] sm:$0xf0] %v214_v23  ;;  %656 = vmatpush.msk.msra.mxu0 %vm440_vm10, %v424_v24  ;;  %674 = vmatpush.msk.msra.mxu3 %vm440_vm10, %v424_v24  ;;  %v415_v30 = vld [vmem:[#allocation2 + $0x18] sm:$0xff] }
 0x106   : > { %v416_v25 = vld [vmem:[#allocation2 + $0x20] sm:$0xff] }
 0x107   : > { %682 = vmatpush.msra.mxu1 %v416_v25  ;;  %462 = vmatpush.msra.mxu0 %v421_v26 }
 0x108   : > { %675 = vmatpush.msra.mxu3 %v421_v26 }
 0x109   : > { %683 = vmatpush.msra.mxu1 %v413_v28  ;;  %463 = vmatpush.msra.mxu0 %v418_v29 }
 0x10a   : > { %676 = vmatpush.msra.mxu3 %v418_v29  ;;  %668 = vmatmul.msk.f32.gmra.mxu2 %vm427_vm12, %v409_v27 }
 0x10b   : > { %464 = vmatpush.msra.mxu0 %v415_v30  ;;  %663 = vmatmul.msk.f32.vlgmr.msra.gmra.mxu1 %vm427_vm12, %v409_v27 }
 0x10c   : > { %677 = vmatpush.msra.mxu3 %v415_v30  ;;  %v412_v31 = vld [vmem:[#allocation2] sm:$0xff] }
 0x10d   : > { %465 = vmatpush.msra.mxu0 %v412_v31 }
 0x10e   : > { %678 = vmatpush.msra.mxu3 %v412_v31  ;;  %657 = vmatmul.msk.f32.vlgmr.msra.gmra.mxu0 %vm427_vm12, %v408_v20 }
 0x10f   : > { %661 = vmatpush.msk.msrb.mxu0 %vm440_vm10, %v425_v8  ;;  %658 = vmatmul.msk.f32.vlgmr.msra.gmra.mxu3 %vm427_vm12, %v409_v27 }
 0x111   : > { %491 = vmatpush.msrb.mxu0 %v422_v10 }
 0x112   : > { %669 = vmatmul.msk.f32.gmra.mxu2 %vm427_vm12, %v410_v32 }
 0x113   : > { %492 = vmatpush.msrb.mxu0 %v419_v12  ;;  %664 = vmatmul.msk.f32.gmra.mxu1 %vm427_vm12, %v410_v32 }
 0x115   : > { %493 = vmatpush.msrb.mxu0 %v416_v25 }
 0x117   : > { %494 = vmatpush.msrb.mxu0 %v413_v28  ;;  %659 = vmatmul.msk.f32.gmra.mxu3 %vm427_vm12, %v410_v32 }
 0x118   : > { %662 = vmatmul.msk.f32.vlgmr.msrb.gmra.mxu0 %vm427_vm12, %v408_v20 }
 0x11a   : > { %670 = vmatmul.msk.f32.gmra.mxu2 %vm427_vm12, %v411_v33 }
 0x11b   : > { %665 = vmatmul.msk.f32.gmra.mxu1 %vm427_vm12, %v411_v33 }
 0x11f   : > { %660 = vmatmul.msk.f32.gmra.mxu3 %vm427_vm12, %v411_v33 }
 0x184   : > { %v525_v34 = vpop.f32.mrf.mxu2 }
 0x185   : > { %540 = vst.msk [vmem:[%s178_s20 + $0x10] sm:$0xff] %vm539_vm13, %v525_v34 }
 0x188   : > { %v499_v35 = vpop.f32.mrf.mxu1 }
 0x189   : > { %542 = vst [vmem:[%s178_s20 + $0x20] sm:$0xff] %v499_v35 }
 0x18b   : > { %v467_v36 = vpop.f32.mrf.mxu0 }
 0x18c   : > { %537 = vst [vmem:[%s178_s20] sm:$0xff] %v467_v36 }
 0x18d   : > { %v528_v37 = vpop.f32.mrf.mxu2 }
 0x18e   : > { %543 = vst.msk [vmem:[%s178_s20 + $0x28] sm:$0xff] %vm539_vm13, %v528_v37 }
 0x190   : > { %v502_v38 = vpop.f32.mrf.mxu1 }
 0x191   : > { %545 = vst [vmem:[%s178_s20 + $0x38] sm:$0xff] %v502_v38 }
 0x192   : > { %v470_v39 = vpop.f32.mrf.mxu3 }
 0x193   : > { %541 = vst [vmem:[%s178_s20 + $0x18] sm:$0xff] %v470_v39 }
 0x195   : > { %v496_v40 = vpop.f32.mrf.mxu0  ;;  %v531_v41 = vpop.f32.mrf.mxu2 }
 0x196   : > { %538 = vst [vmem:[%s178_s20 + $0x8] sm:$0xff] %v496_v40 }
 0x197   : > { %546 = vst.msk [vmem:[%s178_s20 + $0x40] sm:$0xff] %vm539_vm13, %v531_v41 }
 0x198   : > { %v505_v42 = vpop.f32.mrf.mxu1 }
 0x199   : > { %548 = vst [vmem:[%s178_s20 + $0x50] sm:$0xff] %v505_v42 }
 0x19a   : > { %v473_v43 = vpop.f32.mrf.mxu3 }
 0x19b   : > { %544 = vst [vmem:[%s178_s20 + $0x30] sm:$0xff] %v473_v43 }
 0x19d   : > { %v534_v44 = vpop.f32.mrf.mxu2 }
 0x19e   : > { %549 = vst.msk [vmem:[%s178_s20 + $0x58] sm:$0xff] %vm539_vm13, %v534_v44 }
 0x1a2   : > { %v476_v45 = vpop.f32.mrf.mxu3 }
 0x1a3   : > { %547 = vst [vmem:[%s178_s20 + $0x48] sm:$0xff] %v476_v45 }
 0x1a4   : > { %846 = shalt.err (!%p843_p9)
}
 0x1a5   : > { %s903_s29 = smov 384   ;;  %s904_s14 = smov 24  }
 0x1a6   : > { %695 = dma.vmem_to_hbm [thread:$0]  (%p980_p0), %s564_s5, 1536, %s566_s3, %s551_s6, %s903_s29, %s903_s29, %s904_s14  }
 0x1a7 PF: > { %s580_s15 = sand.u32 1, %s877_s9   ;;  %p1146_p10 = scmp.ge.s32.totalorder %s889_s12, 2 }
 0x1a8   : > { %s581_s18 = scalar_lea.sflag [#allocation5], %s580_s15 }
 0x1a9   : > { %p706_p11 = pnand %p1146_p10, %p986_p6 }
 0x1ab   : > { %p707_p12 = pneg %p706_p11 }
 0x1ad   : > { %872 = dma.done.wait (%p707_p12), %s581_s18, 1536  }
 0x1ae   : > { %874 = vsyncadd (%p707_p12), %s581_s18, 4294965760  ;;  %p16_p2 = scmp.ge.s32.totalorder %s960_s23, 4   ;;  %s1147_s9 = smov %s881_s10 }
 0x1af   : > { %s1148_s10 = smov %s885_s11  ;;  %s1149_s11 = smov %s972_s26 }
 0x1b0   : > { %s1150_s12 = smov %s960_s23  ;;  %18 = sbr.rel (!%p16_p2) target bundleno = 6 (0x6), region = 91 }
 0x1b5   :  { %587 = vsyncpa [#allocation4], 1 }
 0x1b6   :  { %589 = vsyncpa [#allocation4 + $0x1], 1 }
 0x1b7   :  { %590 = vsyncpa [#allocation7], 1 }
 0x1b8   :  { %591 = vsyncpa [#allocation5], 1 }
 0x1b9   :  { %593 = vsyncpa [#allocation5 + $0x1], 1 }

</bundles_post_ra>
